<compile_context>
chip_gen: v7x
topology: tpu7x:2x2x1
jax: 0.10.0
libtpu: 0.0.40
codegen_flags: <defaults>
</compile_context>

<pallas_src>
import jax
import jax.numpy as jnp
from jax.experimental import pallas as pl
from jax.experimental.pallas import tpu as pltpu


def nf_kernel(b_ref, wu_ref, wt_ref, ut_ref, x_ref, out_ref, logdet_ref):
    """All planar flows applied sequentially to one (TILE_N, D) batch tile.

    Matches the PyTorch semantics exactly; for each flow i:
        inner       = <w_i, z> + b_i
        det         = 1 + (1 - tanh(inner)^2) * <w_i, u_i>
        sum_log_det += log(|det|)          # evaluated on z BEFORE the update
        z           = z + u_i * tanh(inner)
    """
    # On-chip transpose to the lane-dense (D, TILE_N) compute layout: the
    # batch sits on the 128-wide lane axis so tanh/log/reduce run at full
    # lane occupancy.  XLU transpose; cheap relative to the tile's DMA.
    z = jnp.transpose(x_ref[...].astype(jnp.float32))           # (D, TILE_N)
    tile_n = z.shape[1]
    sum_log_det = jnp.zeros((1, tile_n), jnp.float32)

    # Hoisted grid-invariant parameter blocks (sliced in-register below).
    wt = wt_ref[...].astype(jnp.float32)                        # (D, n_flows)
    ut = ut_ref[...].astype(jnp.float32)                        # (D, n_flows)

    n_flows = wt.shape[1]
    # n_flows is tiny and static -> unrolled Python loop (traced once).
    for i in range(n_flows):
        w_col = wt[:, i:i + 1]                                   # (D, 1)
        u_col = ut[:, i:i + 1]                                   # (D, 1)
        b = b_ref[i]                                             # scalar (SMEM)
        wu = wu_ref[i]                                           # <w_i,u_i> (SMEM)

        # <w, z> + b : full-lane VPU multiply + sublane reduce.
        inner = jnp.sum(z * w_col, axis=0, keepdims=True) + b    # (1, TILE_N)
        t = jnp.tanh(inner)                                      # (1, TILE_N)

        # log|det Jacobian| on the *current* z (before the update).
        h_prime = 1.0 - t * t
        det = 1.0 + h_prime * wu
        sum_log_det = sum_log_det + jnp.log(jnp.abs(det))

        # z <- z + u_i * tanh(inner)  (rank-1 update via VPU broadcasts).
        z = z + u_col * t                                        # (D, TILE_N)

    # Transpose back so the HBM output keeps the natural (N, D) layout.
    out_ref[...] = jnp.transpose(z).astype(out_ref.dtype)        # (TILE_N, D)
    logdet_ref[...] = sum_log_det                                # (1, TILE_N)


def _round_up(a, b):
    return (a + b - 1) // b * b


def normalizing_flow_forward(x, W, U, B, *, tile_n=8192):
    """x: (N, D); W, U: (n_flows, D); B: (n_flows,).

    Returns (transformed_sample (N, D), sum_log_det (N, 1)).
    """
    N, D = x.shape
    n_flows = W.shape[0]

    # Per-flow scalars <w_i, u_i> (algebraic simplification of psi . u).
    WU = jnp.sum(W.astype(jnp.float32) * U.astype(jnp.float32), axis=1)
    Wt = W.T                                            # (D, n_flows)
    Ut = U.T                                            # (D, n_flows)

    # --- Batch tiling -------------------------------------------------------
    n128 = _round_up(N, 128)
    tile_n = _round_up(max(int(tile_n), 128), 128)      # force multiple of 128
    tile_n = min(tile_n, n128)                          # cap only by padded N
    # v7x megacore: keep >=2 grid steps so the "parallel" batch axis shards
    # across both TensorCores (harmless on single-TC v5e/v6e).
    if tile_n >= n128 and n128 >= 256:
        tile_n = 128 * ((n128 // 128 + 1) // 2)

    n_pad = _round_up(N, tile_n)
    x_in = x if n_pad == N else jnp.pad(x, ((0, n_pad - N), (0, 0)))

    grid = (n_pad // tile_n,)
    out_shape = (
        jax.ShapeDtypeStruct((n_pad, D), x.dtype),
        jax.ShapeDtypeStruct((1, n_pad), jnp.float32),
    )

    z_pad, logdet = pl.pallas_call(
        nf_kernel,
        out_shape=out_shape,
        grid_spec=pltpu.PrefetchScalarGridSpec(
            num_scalar_prefetch=2,                      # B, WU -> SMEM
            grid=grid,
            in_specs=[
                pl.BlockSpec((D, n_flows), lambda i, b, wu: (0, 0)),  # Wt
                pl.BlockSpec((D, n_flows), lambda i, b, wu: (0, 0)),  # Ut
                pl.BlockSpec((tile_n, D), lambda i, b, wu: (i, 0)),   # x rows
            ],
            out_specs=(
                pl.BlockSpec((tile_n, D), lambda i, b, wu: (i, 0)),   # z rows
                pl.BlockSpec((1, tile_n), lambda i, b, wu: (0, i)),   # log-det
            ),
        ),
        compiler_params=pltpu.CompilerParams(
            dimension_semantics=("parallel",),
        ),
        # TODO(synk): input_output_aliases={4: 0} would let XLA reuse the
        # padded-x HBM buffer for z (footprint only, not bandwidth).
    )(B, WU, Wt, Ut, x_in)

    z_out = z_pad[:N]                                   # (N, D) - no transpose
    sum_log_det = logdet[0, :N][:, None]                # (N, 1)
    return z_out, sum_log_det


def reference_forward(x, W, U, B):
    """Pure-JAX reference mirroring the PyTorch module (for sanity check)."""
    z = x
    sum_log_det = jnp.zeros((x.shape[0], 1), jnp.float32)
    for i in range(W.shape[0]):
        w = W[i:i + 1]                                  # (1, D)
        u = U[i:i + 1]                                  # (1, D)
        b = B[i]
        inner = z @ w.T + b                             # (N, 1)
        t = jnp.tanh(inner)
        psi = (1.0 - t ** 2) * w                        # (N, D)
        det = 1.0 + psi @ u.T                           # (N, 1)
        sum_log_det = sum_log_det + jnp.log(jnp.abs(det))
        z = z + u * t
    return z, sum_log_det


if __name__ == "__main__":
    D = 32          # flow dimension
    n_flows = 2

    key = jax.random.PRNGKey(0)
    kx, kw, ku, kb, kx2, kx3 = jax.random.split(key, 6)

    # Deterministic parameter init mirroring uniform_(-0.01, 0.01).
    W = jax.random.uniform(kw, (n_flows, D), jnp.float32, -0.01, 0.01)
    U = jax.random.uniform(ku, (n_flows, D), jnp.float32, -0.01, 0.01)
    B = jax.random.uniform(kb, (n_flows,), jnp.float32, -0.01, 0.01)

    # Test 1: tiny batch (single padded tile).
    N1 = 8
    x1 = jax.random.normal(kx, (N1, D), jnp.float32)
    z1, ld1 = normalizing_flow_forward(x1, W, U, B)
    jax.block_until_ready((z1, ld1))
    z1_ref, ld1_ref = reference_forward(x1, W, U, B)
    assert z1.shape == (N1, D) and ld1.shape == (N1, 1)
    assert jnp.allclose(z1, z1_ref, atol=1e-5, rtol=1e-5)
    assert jnp.allclose(ld1, ld1_ref, atol=1e-5, rtol=1e-5)

    # Test 2: ragged batch + non-multiple-of-128 tile request
    # (exercises the tile rounding fix, padding, and a 2-step grid).
    N2 = 300
    x2 = jax.random.normal(kx2, (N2, D), jnp.float32)
    z2, ld2 = normalizing_flow_forward(x2, W, U, B, tile_n=200)
    jax.block_until_ready((z2, ld2))
    z2_ref, ld2_ref = reference_forward(x2, W, U, B)
    assert z2.shape == (N2, D) and ld2.shape == (N2, 1)
    assert jnp.allclose(z2, z2_ref, atol=1e-5, rtol=1e-5)
    assert jnp.allclose(ld2, ld2_ref, atol=1e-5, rtol=1e-5)

    # Test 3: exact multiple of the tile (no-padding path, dual-TC split).
    N3 = 512
    x3 = jax.random.normal(kx3, (N3, D), jnp.float32)
    z3, ld3 = normalizing_flow_forward(x3, W, U, B)
    jax.block_until_ready((z3, ld3))
    z3_ref, ld3_ref = reference_forward(x3, W, U, B)
    assert z3.shape == (N3, D) and ld3.shape == (N3, 1)
    assert jnp.allclose(z3, z3_ref, atol=1e-5, rtol=1e-5)
    assert jnp.allclose(ld3, ld3_ref, atol=1e-5, rtol=1e-5)

    print("KERNEL_OK")
</pallas_src>

<mosaic_0001>
module attributes {stable_mosaic.version = 11 : i64} {
  func.func @nf_kernel(%arg0: i32, %arg1: memref<2xf32, #tpu.memory_space<smem>>, %arg2: memref<2xf32, #tpu.memory_space<smem>>, %arg3: memref<32x2xf32, #tpu.memory_space<vmem>>, %arg4: memref<32x2xf32, #tpu.memory_space<vmem>>, %arg5: memref<128x32xf32, #tpu.memory_space<vmem>>, %arg6: memref<128x32xf32, #tpu.memory_space<vmem>>, %arg7: memref<1x128xf32, #tpu.memory_space<vmem>>) attributes {dimension_semantics = [#tpu.dimension_semantics<parallel>], iteration_bounds = array<i64: 1>, scalar_prefetch = 2 : i64, scratch_operands = 0 : i64, tpu.core_type = #tpu.core_type<tc>, window_params = [{pipeline_mode = #tpu.pipeline_mode<synchronous>, transform_indices = @transform_0, window_bounds = array<i64: 32, 2>}, {pipeline_mode = #tpu.pipeline_mode<synchronous>, transform_indices = @transform_1, window_bounds = array<i64: 32, 2>}, {transform_indices = @transform_2, window_bounds = array<i64: 128, 32>}, {transform_indices = @transform_3, window_bounds = array<i64: 128, 32>}, {transform_indices = @transform_4, window_bounds = array<i64: 1, 128>}]} {
    %c0 = arith.constant 0 : index
    %c0_0 = arith.constant 0 : index
    %0 = vector.load %arg5[%c0, %c0_0] : memref<128x32xf32, #tpu.memory_space<vmem>>, vector<128x32xf32>
    %1 = tpu.transpose %0, [1, 0] : vector<128x32xf32> -> vector<32x128xf32>
    %cst = arith.constant 0.000000e+00 : f32
    %2 = vector.broadcast %cst : f32 to vector<1x128xf32>
    %c0_1 = arith.constant 0 : index
    %c0_2 = arith.constant 0 : index
    %3 = vector.load %arg3[%c0_1, %c0_2] : memref<32x2xf32, #tpu.memory_space<vmem>>, vector<32x2xf32>
    %c0_3 = arith.constant 0 : index
    %c0_4 = arith.constant 0 : index
    %4 = vector.load %arg4[%c0_3, %c0_4] : memref<32x2xf32, #tpu.memory_space<vmem>>, vector<32x2xf32>
    %5 = vector.extract_strided_slice %3 {offsets = [0, 0], sizes = [32, 1], strides = [1, 1]} : vector<32x2xf32> to vector<32x1xf32>
    %6 = vector.extract_strided_slice %4 {offsets = [0, 0], sizes = [32, 1], strides = [1, 1]} : vector<32x2xf32> to vector<32x1xf32>
    %c0_5 = arith.constant 0 : index
    %7 = memref.load %arg1[%c0_5] : memref<2xf32, #tpu.memory_space<smem>>
    %c0_6 = arith.constant 0 : index
    %8 = memref.load %arg2[%c0_6] : memref<2xf32, #tpu.memory_space<smem>>
    %9 = vector.broadcast %5 : vector<32x1xf32> to vector<32x128xf32>
    %10 = arith.mulf %1, %9 : vector<32x128xf32>
    %cst_7 = arith.constant dense<0.000000e+00> : vector<128xf32>
    %11 = vector.multi_reduction <add>, %10, %cst_7 [0] : vector<32x128xf32> to vector<128xf32>
    %12 = vector.shape_cast %11 : vector<128xf32> to vector<1x128xf32>
    %13 = vector.broadcast %7 : f32 to vector<1x128xf32>
    %14 = arith.addf %12, %13 : vector<1x128xf32>
    %15 = math.tanh %14 : vector<1x128xf32>
    %16 = arith.mulf %15, %15 : vector<1x128xf32>
    %cst_8 = arith.constant 1.000000e+00 : f32
    %17 = vector.broadcast %cst_8 : f32 to vector<1x128xf32>
    %18 = arith.subf %17, %16 : vector<1x128xf32>
    %19 = vector.broadcast %8 : f32 to vector<1x128xf32>
    %20 = arith.mulf %18, %19 : vector<1x128xf32>
    %cst_9 = arith.constant 1.000000e+00 : f32
    %21 = vector.broadcast %cst_9 : f32 to vector<1x128xf32>
    %22 = arith.addf %21, %20 : vector<1x128xf32>
    %23 = math.absf %22 : vector<1x128xf32>
    %24 = math.log %23 : vector<1x128xf32>
    %25 = arith.addf %2, %24 : vector<1x128xf32>
    %26 = vector.broadcast %6 : vector<32x1xf32> to vector<32x128xf32>
    %27 = vector.broadcast %15 : vector<1x128xf32> to vector<32x128xf32>
    %28 = arith.mulf %26, %27 : vector<32x128xf32>
    %29 = arith.addf %1, %28 : vector<32x128xf32>
    %30 = vector.extract_strided_slice %3 {offsets = [0, 1], sizes = [32, 1], strides = [1, 1]} : vector<32x2xf32> to vector<32x1xf32>
    %31 = vector.extract_strided_slice %4 {offsets = [0, 1], sizes = [32, 1], strides = [1, 1]} : vector<32x2xf32> to vector<32x1xf32>
    %c1 = arith.constant 1 : index
    %32 = memref.load %arg1[%c1] : memref<2xf32, #tpu.memory_space<smem>>
    %c1_10 = arith.constant 1 : index
    %33 = memref.load %arg2[%c1_10] : memref<2xf32, #tpu.memory_space<smem>>
    %34 = vector.broadcast %30 : vector<32x1xf32> to vector<32x128xf32>
    %35 = arith.mulf %29, %34 : vector<32x128xf32>
    %cst_11 = arith.constant dense<0.000000e+00> : vector<128xf32>
    %36 = vector.multi_reduction <add>, %35, %cst_11 [0] : vector<32x128xf32> to vector<128xf32>
    %37 = vector.shape_cast %36 : vector<128xf32> to vector<1x128xf32>
    %38 = vector.broadcast %32 : f32 to vector<1x128xf32>
    %39 = arith.addf %37, %38 : vector<1x128xf32>
    %40 = math.tanh %39 : vector<1x128xf32>
    %41 = arith.mulf %40, %40 : vector<1x128xf32>
    %cst_12 = arith.constant 1.000000e+00 : f32
    %42 = vector.broadcast %cst_12 : f32 to vector<1x128xf32>
    %43 = arith.subf %42, %41 : vector<1x128xf32>
    %44 = vector.broadcast %33 : f32 to vector<1x128xf32>
    %45 = arith.mulf %43, %44 : vector<1x128xf32>
    %cst_13 = arith.constant 1.000000e+00 : f32
    %46 = vector.broadcast %cst_13 : f32 to vector<1x128xf32>
    %47 = arith.addf %46, %45 : vector<1x128xf32>
    %48 = math.absf %47 : vector<1x128xf32>
    %49 = math.log %48 : vector<1x128xf32>
    %50 = arith.addf %25, %49 : vector<1x128xf32>
    %51 = vector.broadcast %31 : vector<32x1xf32> to vector<32x128xf32>
    %52 = vector.broadcast %40 : vector<1x128xf32> to vector<32x128xf32>
    %53 = arith.mulf %51, %52 : vector<32x128xf32>
    %54 = arith.addf %29, %53 : vector<32x128xf32>
    %55 = tpu.transpose %54, [1, 0] : vector<32x128xf32> -> vector<128x32xf32>
    %c0_14 = arith.constant 0 : index
    %c0_15 = arith.constant 0 : index
    %56 = vector.load %arg6[%c0_14, %c0_15] : memref<128x32xf32, #tpu.memory_space<vmem>>, vector<128x32xf32>
    tpu.vector_store %arg6[%c0_14, %c0_15], %55 {strides = array<i32>} : memref<128x32xf32, #tpu.memory_space<vmem>>, vector<128x32xf32>,
    %c0_16 = arith.constant 0 : index
    %c0_17 = arith.constant 0 : index
    %57 = vector.load %arg7[%c0_16, %c0_17] : memref<1x128xf32, #tpu.memory_space<vmem>>, vector<1x128xf32>
    tpu.vector_store %arg7[%c0_16, %c0_17], %50 {strides = array<i32>} : memref<1x128xf32, #tpu.memory_space<vmem>>, vector<1x128xf32>,
    return
  }
  func.func @transform_0(%arg0: i32, %arg1: memref<2xf32, #tpu.memory_space<smem>>, %arg2: memref<2xf32, #tpu.memory_space<smem>>) -> (i32, i32) {
    %c0_i32 = arith.constant 0 : i32
    %c0_i32_0 = arith.constant 0 : i32
    %c0_i32_1 = arith.constant 0 : i32
    return %c0_i32, %c0_i32_0 : i32, i32
  }
  func.func @transform_1(%arg0: i32, %arg1: memref<2xf32, #tpu.memory_space<smem>>, %arg2: memref<2xf32, #tpu.memory_space<smem>>) -> (i32, i32) {
    %c0_i32 = arith.constant 0 : i32
    %c0_i32_0 = arith.constant 0 : i32
    %c0_i32_1 = arith.constant 0 : i32
    return %c0_i32, %c0_i32_0 : i32, i32
  }
  func.func @transform_2(%arg0: i32, %arg1: memref<2xf32, #tpu.memory_space<smem>>, %arg2: memref<2xf32, #tpu.memory_space<smem>>) -> (i32, i32) {
    %c0_i32 = arith.constant 0 : i32
    %c0_i32_0 = arith.constant 0 : i32
    return %arg0, %c0_i32 : i32, i32
  }
  func.func @transform_3(%arg0: i32, %arg1: memref<2xf32, #tpu.memory_space<smem>>, %arg2: memref<2xf32, #tpu.memory_space<smem>>) -> (i32, i32) {
    %c0_i32 = arith.constant 0 : i32
    %c0_i32_0 = arith.constant 0 : i32
    return %arg0, %c0_i32 : i32, i32
  }
  func.func @transform_4(%arg0: i32, %arg1: memref<2xf32, #tpu.memory_space<smem>>, %arg2: memref<2xf32, #tpu.memory_space<smem>>) -> (i32, i32) {
    %c0_i32 = arith.constant 0 : i32
    %c0_i32_0 = arith.constant 0 : i32
    return %c0_i32, %arg0 : i32, i32
  }
}

</mosaic_0001>

<bundles_post_ra>
// kernel: tpu_custom_call.1
= control target key start
LH: loop header
LB: loop body
LE: loop exit
PB: predicated region body
PF: predicated region fallthrough
CT: control target
= control target key end

     0   :  { %s559_s0 = inlined_call_operand.vmem [shape: f32[2], index: 0, kind: input, shape index: {}]   ;;  %s560_s2 = inlined_call_operand.vmem [shape: f32[32,2], index: 2, kind: input, shape index: {}]   ;;  %s561_s3 = inlined_call_operand.vmem [shape: f32[32,2], index: 3, kind: input, shape index: {}]   ;;  %s562_s4 = inlined_call_operand.vmem [shape: f32[128,32], index: 4, kind: input, shape index: {}]   ;;  %s563_s5 = inlined_call_operand.vmem [shape: f32[128,32], index: 5, kind: output, shape index: {0}]   ;;  %s564_s6 = inlined_call_operand.hbm [shape: f32[1,128], index: 6, kind: output, shape index: {1}]   ;;  %s565_s1 = inlined_call_operand.vmem [shape: f32[2], index: 1, kind: input, shape index: {}]  }
   0x1   :  { %s12_s23 = sshll.u32 %s559_s0, 4  ;;  %s16_s26 = sshll.u32 %s565_s1, 4  ;;  %s13_s23 = int_to_ptr.vmem [resolvable:$true] %s12_s23  ;;  %s17_s26 = int_to_ptr.vmem [resolvable:$true] %s16_s26 }
   0x2   :  { %s315_s27 = scalar_lea.vmem %s13_s23, 16  ;;  %p320_p1 = scmp.lt.s32.totalorder %s13_s23, %s13_s23 }
   0x3   :  { %p316_p0 = scmp.ne.s32.totalorder %s13_s23, %s315_s27  ;;  %p321_p2 = scmp.lt.s32.totalorder %s315_s27, %s315_s27 }
   0x5   :  { %p322_p3 = por %p321_p2, %p320_p1 }
   0x7   :  { %p323_p4 = pnand %p322_p3, %p316_p0 }
   0x9   :  { %326 = shalt.err (!%p323_p4)  }
   0xa   :  { %s365_s28 = smov [#allocation3]   ;;  %s327_s29 = scalar_lea.vmem %s17_s26, 16 }
   0xb   :  { %15 = dma.vmem_to_smem %s13_s23, 16, %s365_s28, [#allocation2] }
   0xc   :  { %p328_p5 = scmp.ne.s32.totalorder %s17_s26, %s327_s29  ;;  %p332_p6 = scmp.lt.s32.totalorder %s17_s26, %s17_s26 }
   0xd   :  { %p333_p7 = scmp.lt.s32.totalorder %s327_s29, %s327_s29 }
   0xf   :  { %p334_p8 = por %p333_p7, %p332_p6 }
  0x11   :  { %p335_p9 = pnand %p334_p8, %p328_p5 }
  0x13   :  { %338 = shalt.err (!%p335_p9)  }
  0x14   :  { %s366_s0 = smov [#allocation4]  }
  0x15   :  { %19 = dma.vmem_to_smem %s17_s26, 16, %s366_s0, [#allocation2] }
  0x16   :  { %361 = dma.done.wait [#allocation2], 32 }
  0x17   :  { %362 = vsyncadd [#allocation2], 4294967264 }
  0x18   :  { %21 = sfence }
  0x19   :  { %v77_v0 = vld [vmem:[%s560_s2] sm:$0xff]  ;;  %v79_v1 = vld [vmem:[%s560_s2 + $0x10] sm:$0xff]  ;;  %v367_v2 = vmov 0   ;;  %v78_v3 = vld [vmem:[%s560_s2 + $0x8] sm:$0xff] }
  0x1a   :  { %303 = vset.pattern.permute.xlu0 %v367_v2  ;;  %304 = vset.pattern.permute.xlu1 %v367_v2  ;;  %v80_v4 = vld [vmem:[%s560_s2 + $0x18] sm:$0xff]  ;;  %v81_v5 = vld [vmem:[%s561_s3] sm:$0xff] }
  0x1b   :  { %89 = vperm.xlu0 %303, %v77_v0   ;;  %99 = vperm.xlu1 %304, %v79_v1  }
  0x1f   :  { %94 = vperm.xlu0 %303, %v78_v3   ;;  %104 = vperm.xlu1 %304, %v80_v4  }
  0x20   :  { %22 = vsyncpa [#allocation6], 0  ;;  %v82_v6 = vld [vmem:[%s561_s3 + $0x8] sm:$0xff]  ;;  %v83_v7 = vld [vmem:[%s561_s3 + $0x10] sm:$0xff]  ;;  %v368_v9 = vmov 1   ;;  %s295_s24 = sld [smem:[#allocation3 + $0x1]] }
  0x21   :  { %v84_v8 = vld [vmem:[%s561_s3 + $0x18] sm:$0xff]  ;;  %v29_v10 = vld [vmem:[%s562_s4] sm:$0xff]  ;;  %v30_v11 = vld [vmem:[%s562_s4 + $0x8] sm:$0xff]  ;;  %s86_s25 = sld [smem:[#allocation4]]  ;;  %s296_s3 = sld [smem:[#allocation4 + $0x1]] }
  0x22   :  { %v31_v12 = vld [vmem:[%s562_s4 + $0x10] sm:$0xff]  ;;  %v32_v13 = vld [vmem:[%s562_s4 + $0x18] sm:$0xff]  ;;  %v33_v14 = vld [vmem:[%s562_s4 + $0x20] sm:$0xff]  ;;  %s369_s26 = smov [#allocation5]  }
  0x23   :  { %134 = vperm.xlu1 %304, %v81_v5   ;;  %v34_v15 = vld [vmem:[%s562_s4 + $0x28] sm:$0xff]  ;;  %v35_v16 = vld [vmem:[%s562_s4 + $0x30] sm:$0xff]  ;;  %v36_v17 = vld [vmem:[%s562_s4 + $0x38] sm:$0xff]  ;;  %s285_s27 = sshll.u32 %s369_s26, 4  ;;  %s286_s27 = int_to_ptr.vmem [resolvable:$true] %s285_s27 }
  0x24   :  { %v37_v18 = vld [vmem:[%s562_s4 + $0x40] sm:$0xff]  ;;  %v38_v19 = vld [vmem:[%s562_s4 + $0x48] sm:$0xff]  ;;  %v39_v20 = vld [vmem:[%s562_s4 + $0x50] sm:$0xff]  ;;  %s339_s28 = scalar_lea.vmem %s286_s27, 16  ;;  %s343_s29 = scalar_lea.vmem %s286_s27, 32 }
  0x25   :  { %v40_v21 = vld [vmem:[%s562_s4 + $0x58] sm:$0xff]  ;;  %v41_v22 = vld [vmem:[%s562_s4 + $0x60] sm:$0xff]  ;;  %v42_v23 = vld [vmem:[%s562_s4 + $0x68] sm:$0xff]  ;;  %p340_p10 = scmp.ne.s32.totalorder %s286_s27, %s339_s28  ;;  %p344_p11 = scmp.lt.s32.totalorder %s286_s27, %s286_s27 }
  0x26   :  { %v43_v24 = vld [vmem:[%s562_s4 + $0x70] sm:$0xff]  ;;  %v44_v25 = vld [vmem:[%s562_s4 + $0x78] sm:$0xff]  ;;  %s85_s4 = sld [smem:[#allocation3]]  ;;  %p345_p12 = scmp.lt.s32.totalorder %s343_s29, %s339_s28 }
  0x27   :  { %139 = vperm.xlu1 %304, %v82_v6  }
  0x28   :  { %p346_p13 = por %p345_p12, %p344_p11 }
  0x2a   :  { %p347_p0 = pnand %p346_p13, %p340_p10 }
  0x2b   :  { %144 = vperm.xlu1 %304, %v83_v7  }
  0x2c   :  { %v120_v50 = vstv %s85_s4 }
  0x2f   :  { %149 = vperm.xlu1 %304, %v84_v8  }
  0x33   :  { %305 = vset.pattern.permute.xlu1 %v368_v9 }
  0x34   :  { %163 = vperm.xlu1 %305, %v77_v0  }
  0x38   :  { %167 = vperm.xlu1 %305, %v78_v3  }
  0x3c   :  { %171 = vperm.xlu1 %305, %v79_v1  }
  0x3d   :  { %45 = vxpose.xlu0.b32.start [1/16] (narrow) %v29_v10, 32 }
  0x40   :  { %175 = vperm.xlu1 %305, %v80_v4  }
  0x41   :  { %46 = vxpose.xlu0.b32.cont [2/16] (narrow) %v30_v11, 32 }
  0x44   :  { %204 = vperm.xlu1 %305, %v81_v5  }
  0x45   :  { %47 = vxpose.xlu0.b32.cont [3/16] (narrow) %v31_v12, 32 }
  0x48   :  { %208 = vperm.xlu1 %305, %v82_v6  }
  0x49   :  { %48 = vxpose.xlu0.b32.cont [4/16] (narrow) %v32_v13, 32 }
  0x4c   :  { %212 = vperm.xlu1 %305, %v83_v7  }
  0x4d   :  { %49 = vxpose.xlu0.b32.cont [5/16] (narrow) %v33_v14, 32  ;;  %v191_v14 = vstv %s295_s24 }
  0x50   :  { %216 = vperm.xlu1 %305, %v84_v8  }
  0x51   :  { %50 = vxpose.xlu0.b32.cont [6/16] (narrow) %v34_v15, 32 }
  0x55   :  { %51 = vxpose.xlu0.b32.cont [7/16] (narrow) %v35_v16, 32 }
  0x59   :  { %52 = vxpose.xlu0.b32.cont [8/16] (narrow) %v36_v17, 32 }
  0x5d   :  { %53 = vxpose.xlu0.b32.cont [9/16] (narrow) %v37_v18, 32 }
  0x61   :  { %54 = vxpose.xlu0.b32.cont [10/16] (narrow) %v38_v19, 32 }
  0x65   :  { %55 = vxpose.xlu0.b32.cont [11/16] (narrow) %v39_v20, 32  ;;  %v125_v20 = vstv %s86_s25 }
  0x69   :  { %56 = vxpose.xlu0.b32.cont [12/16] (narrow) %v40_v21, 32 }
  0x6d   :  { %57 = vxpose.xlu0.b32.cont [13/16] (narrow) %v41_v22, 32 }
  0x71   :  { %58 = vxpose.xlu0.b32.cont [14/16] (narrow) %v42_v23, 32 }
  0x75   :  { %59 = vxpose.xlu0.b32.cont [15/16] (narrow) %v43_v24, 32 }
  0x79   :  { %60 = vxpose.xlu0.b32.end [16/16] (narrow) %v44_v25, 32 }
  0x9a   :  { %v90_v26 = vpop.permute.xlu0 %89  ;;  %v100_v27 = vpop.permute.xlu1 %99 }
  0x9e   :  { %v95_v28 = vpop.permute.xlu0 %94  ;;  %v105_v30 = vpop.permute.xlu1 %104 }
  0xa2   :  { %306 = vset.pattern.permute.xlu0 %v368_v9  ;;  %v135_v32 = vpop.permute.xlu1 %134 }
  0xa6   :  { %v140_v39 = vpop.permute.xlu1 %139 }
  0xaa   :  { %v145_v44 = vpop.permute.xlu1 %144 }
  0xae   :  { %v150_v48 = vpop.permute.xlu1 %149 }
  0xb3   :  { %v164_v53 = vpop.permute.xlu1 %163 }
  0xb7   :  { %v168_v54 = vpop.permute.xlu1 %167 }
  0xbb   :  { %v172_v60 = vpop.permute.xlu1 %171 }
  0xbd   :  { %v61_v29 = vpop.trf.xlu0 }
  0xbe   :  { %v107_v35 = vmul.f32 %v90_v26, %v61_v29 }
  0xbf   :  { %v176_v5 = vpop.permute.xlu1 %175 }
  0xc1   :  { %v62_v31 = vpop.trf.xlu0 }
  0xc2   :  { %v108_v33 = vmul.f32 %v95_v28, %v62_v31 }
  0xc3   :  { %v205_v18 = vpop.permute.xlu1 %204 }
  0xc4   :  { %v111_v37 = vadd.f32 %v108_v33, %v107_v35 }
  0xc5   :  { %v63_v34 = vpop.trf.xlu0 }
  0xc6   :  { %v109_v36 = vmul.f32 %v100_v27, %v63_v34 }
  0xc7   :  { %v209_v21 = vpop.permute.xlu1 %208 }
  0xc8   :  { %v112_v40 = vadd.f32 %v111_v37, %v109_v36 }
  0xc9   :  { %v64_v38 = vpop.trf.xlu0 }
  0xca   :  { %v110_v41 = vmul.f32 %v105_v30, %v64_v38 }
  0xcb   :  { %v213_v30 = vpop.permute.xlu1 %212 }
  0xcc   :  { %v113_v42 = vadd.f32 %v112_v40, %v110_v41 }
  0xce   :  { %v114_v43 = vrot.slane %v113_v42, 4 }
  0xcf   :  { %v217_v37 = vpop.permute.xlu1 %216 }
  0xd0   :  { %v115_v45 = vadd.f32 %v114_v43, %v113_v42 }
  0xd2   :  { %v116_v46 = vrot.slane %v115_v45, 2 }
  0xd4   :  { %v117_v47 = vadd.f32 %v116_v46, %v115_v45 }
  0xd6   :  { %v118_v49 = vrot.slane %v117_v47, 1 }
  0xd8   :  { %v119_v51 = vadd.f32 %v118_v49, %v117_v47 }
  0xda   :  { %v121_v52 = vadd.f32 %v120_v50, %v119_v51 }
  0xdc   :  { %307 = vtanh.f32 %v121_v52 }
  0xe6   :  { %v308_v55 = vpop.eup %307 }
  0xe7   :  { %v155_v56 = vmul.f32 %v308_v55, %v150_v48  ;;  %v152_v57 = vmul.f32 %v308_v55, %v135_v32  ;;  %v153_v58 = vmul.f32 %v308_v55, %v140_v39  ;;  %v154_v59 = vmul.f32 %v308_v55, %v145_v44 }
  0xe8   :  { %v123_v17 = vmul.f32 %v308_v55, %v308_v55 }
  0xe9   :  { %v156_v61 = vadd.f32 %v152_v57, %v61_v29  ;;  %v157_v62 = vadd.f32 %v153_v58, %v62_v31  ;;  %v158_v63 = vadd.f32 %v154_v59, %v63_v34  ;;  %v159_v0 = vadd.f32 %v155_v56, %v64_v38 }
  0xea   :  { %v124_v19 = vsub.f32 1.0, %v123_v17  ;;  %v196_v29 = vstv %s296_s3 }
  0xeb   :  { %v178_v1 = vmul.f32 %v164_v53, %v156_v61  ;;  %v179_v2 = vmul.f32 %v168_v54, %v157_v62  ;;  %v180_v4 = vmul.f32 %v172_v60, %v158_v63  ;;  %v181_v7 = vmul.f32 %v176_v5, %v159_v0 }
  0xec   :  { %v126_v22 = vmul.f32 %v125_v20, %v124_v19 }
  0xed   :  { %v182_v3 = vadd.f32 %v179_v2, %v178_v1 }
  0xee   :  { %v127_v25 = vadd.f32 1.0, %v126_v22 }
  0xef   :  { %v183_v6 = vadd.f32 %v182_v3, %v180_v4 }
  0xf0   :  { %v128_v32 = vand.u32 2147483647, %v127_v25 }
  0xf1   :  { %v184_v8 = vadd.f32 %v183_v6, %v181_v7 }
  0xf3   :  { %v185_v9 = vrot.slane %v184_v8, 4 }
  0xf5   :  { %v186_v10 = vadd.f32 %v185_v9, %v184_v8 }
  0xf7   :  { %v187_v11 = vrot.slane %v186_v10, 2 }
  0xf9   :  { %v188_v12 = vadd.f32 %v187_v11, %v186_v10 }
  0xfb   :  { %v189_v13 = vrot.slane %v188_v12, 1 }
  0xfd   :  { %v190_v15 = vadd.f32 %v189_v13, %v188_v12 }
  0xff   :  { %v192_v16 = vadd.f32 %v191_v14, %v190_v15 }
 0x101   :  { %309 = vtanh.f32 %v192_v16 }
 0x102   :  { %311 = vlog2.f32 %v128_v32 }
 0x10b   :  { %v310_v23 = vpop.eup %309 }
 0x10c   :  { %v219_v24 = vmul.f32 %v310_v23, %v205_v18  ;;  %v194_v26 = vmul.f32 %v310_v23, %v310_v23  ;;  %v220_v28 = vmul.f32 %v310_v23, %v209_v21  ;;  %v221_v35 = vmul.f32 %v310_v23, %v213_v30  ;;  %v312_v42 = vpop.eup %311 }
 0x10d   :  { %v222_v40 = vmul.f32 %v310_v23, %v217_v37  ;;  %v130_v44 = vmul.f32 0.6931472, %v312_v42 }
 0x10e   :  { %v223_v27 = vadd.f32 %v219_v24, %v156_v61  ;;  %v195_v31 = vsub.f32 1.0, %v194_v26  ;;  %v224_v34 = vadd.f32 %v220_v28, %v157_v62  ;;  %v225_v39 = vadd.f32 %v221_v35, %v158_v63 }
 0x10f   :  { %v226_v41 = vadd.f32 %v222_v40, %v159_v0 }
 0x110   :  { %227 = vxpose.xlu1.b32.start [1/4] (short) %v223_v27, 128  ;;  %v197_v33 = vmul.f32 %v196_v29, %v195_v31 }
 0x112   :  { %v198_v36 = vadd.f32 1.0, %v197_v33 }
 0x114   :  { %228 = vxpose.xlu1.b32.cont [2/4] (short) %v224_v34, 128  ;;  %v199_v38 = vand.u32 2147483647, %v198_v36 }
 0x116   :  { %313 = vlog2.f32 %v199_v38 }
 0x118   :  { %229 = vxpose.xlu1.b32.cont [3/4] (short) %v225_v39, 128 }
 0x11c   :  { %230 = vxpose.xlu1.b32.end [4/4] (short) %v226_v41, 128 }
 0x120   :  { %v314_v43 = vpop.eup %313 }
 0x121   :  { %v201_v45 = vmul.f32 0.6931472, %v314_v43 }
 0x123   :  { %v202_v46 = vadd.f32 %v201_v45, %v130_v44 }
 0x125   :  { %276 = vst [vmem:[#allocation5] sm:$0x1] %v202_v46 }
 0x126   :  { %350 = shalt.err (!%p347_p0)
}
 0x127   :  { %s351_s30 = scalar_lea.hbm %s564_s6, 16 }
 0x128   :  { %p352_p1 = scmp.ne.s32.totalorder %s564_s6, %s351_s30  ;;  %p355_p2 = scmp.lt.u32.totalorder %s351_s30, %s564_s6 }
 0x12a   :  { %p357_p3 = pnand %p355_p2, %p352_p1 }
 0x12c   :  { %360 = shalt.err (!%p357_p3)
}
 0x12d   :  { %288 = dma.vmem_to_hbm [thread:$0]  %s286_s27, 16, %s564_s6, [#allocation6]   ;;  %vm259_vm0 = vcmask 261120  }
 0x190   :  { %v243_v47 = vpop.trf.xlu1 }
 0x191   :  { %260 = vst.msk [vmem:[%s563_s5] sm:$0xff] %vm259_vm0, %v243_v47 }
 0x194   :  { %v244_v48 = vpop.trf.xlu1 }
 0x195   :  { %261 = vst.msk [vmem:[%s563_s5 + $0x8] sm:$0xff] %vm259_vm0, %v244_v48 }
 0x198   :  { %v245_v49 = vpop.trf.xlu1 }
 0x199   :  { %262 = vst.msk [vmem:[%s563_s5 + $0x10] sm:$0xff] %vm259_vm0, %v245_v49 }
 0x19c   :  { %v246_v50 = vpop.trf.xlu1 }
 0x19d   :  { %263 = vst.msk [vmem:[%s563_s5 + $0x18] sm:$0xff] %vm259_vm0, %v246_v50 }
 0x1a0   :  { %v247_v51 = vpop.trf.xlu1 }
 0x1a1   :  { %264 = vst.msk [vmem:[%s563_s5 + $0x20] sm:$0xff] %vm259_vm0, %v247_v51 }
 0x1a4   :  { %v248_v52 = vpop.trf.xlu1 }
 0x1a5   :  { %265 = vst.msk [vmem:[%s563_s5 + $0x28] sm:$0xff] %vm259_vm0, %v248_v52 }
 0x1a8   :  { %v249_v53 = vpop.trf.xlu1 }
 0x1a9   :  { %266 = vst.msk [vmem:[%s563_s5 + $0x30] sm:$0xff] %vm259_vm0, %v249_v53 }
 0x1ac   :  { %v250_v54 = vpop.trf.xlu1 }
 0x1ad   :  { %267 = vst.msk [vmem:[%s563_s5 + $0x38] sm:$0xff] %vm259_vm0, %v250_v54 }
 0x1b0   :  { %v251_v55 = vpop.trf.xlu1 }
 0x1b1   :  { %268 = vst.msk [vmem:[%s563_s5 + $0x40] sm:$0xff] %vm259_vm0, %v251_v55 }
 0x1b4   :  { %v252_v56 = vpop.trf.xlu1 }
 0x1b5   :  { %269 = vst.msk [vmem:[%s563_s5 + $0x48] sm:$0xff] %vm259_vm0, %v252_v56 }
 0x1b8   :  { %v253_v57 = vpop.trf.xlu1 }
 0x1b9   :  { %270 = vst.msk [vmem:[%s563_s5 + $0x50] sm:$0xff] %vm259_vm0, %v253_v57 }
 0x1bc   :  { %v254_v58 = vpop.trf.xlu1 }
 0x1bd   :  { %271 = vst.msk [vmem:[%s563_s5 + $0x58] sm:$0xff] %vm259_vm0, %v254_v58 }
 0x1c0   :  { %v255_v59 = vpop.trf.xlu1 }
 0x1c1   :  { %272 = vst.msk [vmem:[%s563_s5 + $0x60] sm:$0xff] %vm259_vm0, %v255_v59 }
 0x1c4   :  { %v256_v60 = vpop.trf.xlu1 }
 0x1c5   :  { %273 = vst.msk [vmem:[%s563_s5 + $0x68] sm:$0xff] %vm259_vm0, %v256_v60 }
 0x1c8   :  { %v257_v61 = vpop.trf.xlu1 }
 0x1c9   :  { %274 = vst.msk [vmem:[%s563_s5 + $0x70] sm:$0xff] %vm259_vm0, %v257_v61 }
 0x1cc   :  { %v258_v62 = vpop.trf.xlu1 }
 0x1cd   :  { %275 = vst.msk [vmem:[%s563_s5 + $0x78] sm:$0xff] %vm259_vm0, %v258_v62 }
 0x1ce   :  { %363 = dma.done.wait [#allocation6], 16  }
 0x1cf   :  { %364 = vsyncadd [#allocation6], 4294967280 }
 0x1d0   :  { %294 = vsyncpa [#allocation6], 1 }

</bundles_post_ra>
